<compile_context>
chip_gen: v7x
topology: tpu7x:2x2x1
jax: 0.10.0
libtpu: 0.0.40
codegen_flags: <defaults>
</compile_context>

<pallas_src>
import jax
import jax.numpy as jnp
from jax.experimental import pallas as pl
from jax.experimental.pallas import tpu as pltpu

# Tile targets sized for the 256x256 MXU on v6e/v7x (also fine 128-multiples for
# v5e's 4x128x128 MXU) while keeping the double-buffered VMEM footprint small.
_TM_TARGET = 256
_TN_TARGET = 512
_TK_TARGET = 1024
_VMEM_LIMIT_BYTES = 32 * 1024 * 1024


def _round_up(v, m):
    return (v + m - 1) // m * m


def prepare_params(weight, bias):
    """One-time parameter prep (init-time, NOT per forward call).

    weight: [out_features, in_features]  (PyTorch nn.Linear layout)
    bias:   [out_features]

    Returns:
      w_t: [in_padded, out_padded]  bf16, pre-transposed + padded
      b2d: [1, out_padded]          f32 bias, lane-padded
    """
    out_f, in_f = weight.shape
    out_p = _round_up(out_f, 128)  # lane-dense output width (unmasked vst)
    # The K (reduction) axis must never be ragged inside the kernel: pre-pad it
    # with zeros when it is too large to live in one full-extent block.
    in_p = in_f if in_f <= _TK_TARGET else _round_up(in_f, 128)

    w_t = jnp.zeros((in_p, out_p), jnp.bfloat16)
    w_t = w_t.at[:in_f, :out_f].set(weight.T.astype(jnp.bfloat16))
    b2d = jnp.zeros((1, out_p), jnp.float32)
    b2d = b2d.at[:, :out_f].set(bias.astype(jnp.float32))
    return w_t, b2d


def _linear_kernel_single_k(x_ref, w_ref, b_ref, o_ref):
    # K fits in a single block: no scratch accumulator, no init/finalize.
    o_ref[...] = (
        jnp.dot(x_ref[...], w_ref[...], preferred_element_type=jnp.float32)
        + b_ref[...]
    ).astype(o_ref.dtype)


def _linear_kernel_multi_k(x_ref, w_ref, b_ref, o_ref, acc_ref):
    k = pl.program_id(2)

    @pl.when(k == 0)
    def _init():
        acc_ref[...] = jnp.zeros_like(acc_ref)

    # bf16 x bf16 -> f32 accumulation: MXU native fast path on all generations.
    acc_ref[...] += jnp.dot(
        x_ref[...], w_ref[...], preferred_element_type=jnp.float32
    )

    @pl.when(k == pl.num_programs(2) - 1)
    def _finalize():
        o_ref[...] = (acc_ref[...] + b_ref[...]).astype(o_ref.dtype)


def fcnet_forward(x, w_t, b2d, out_features, *, return_padded=False):
    """y = x @ W.T + b with PyTorch nn.Linear semantics.

    x:   [B, in_features]
    w_t: [in_padded, out_padded]  (from prepare_params)
    b2d: [1, out_padded]
    """
    B, in_f = x.shape
    in_p, out_p = w_t.shape
    assert in_p >= in_f and out_p % 128 == 0
    out_dtype = x.dtype

    # Cast x to bf16 once here (wrapper side): halves the x DMA bytes and keeps
    # the per-grid-step kernel body free of VPU casts.
    x_bf = x.astype(jnp.bfloat16)
    if in_p != in_f:
        # K was zero-padded at init time; zero-pad x to match (safe for the sum).
        x_bf = jnp.pad(x_bf, ((0, 0), (0, in_p - in_f)))

    # M / N tiles: full-extent when small (always legal), otherwise fixed
    # MXU-friendly tiles; ragged last blocks along M/N are fine (masked stores).
    tm = B if B <= _TM_TARGET else _TM_TARGET
    tn = out_p if out_p <= _TN_TARGET else _TN_TARGET

    # K tile: full-extent when small, otherwise a 128-multiple that divides
    # in_p (in_p is a 128-multiple in that case) -- never ragged.
    if in_p <= _TK_TARGET:
        tk = in_p
    else:
        tk = 128
        t = _TK_TARGET
        while t >= 128:
            if in_p % t == 0:
                tk = t
                break
            t -= 128

    # Keep both v7x TensorCores busy: if neither parallel axis would have >= 2
    # blocks, split the lane axis (harmless on single-TC chips).
    if B <= tm and out_p <= tn and out_p >= 256:
        tn = (out_p // 2 // 128) * 128

    gm = pl.cdiv(B, tm)
    gn = pl.cdiv(out_p, tn)
    gk = pl.cdiv(in_p, tk)

    if gk == 1:
        y_p = pl.pallas_call(
            _linear_kernel_single_k,
            out_shape=jax.ShapeDtypeStruct((B, out_p), out_dtype),
            grid=(gm, gn),
            in_specs=[
                pl.BlockSpec((tm, tk), lambda i, j: (i, 0)),   # x tile (bf16)
                pl.BlockSpec((tk, tn), lambda i, j: (0, j)),   # pre-transposed W
                pl.BlockSpec((1, tn), lambda i, j: (0, j)),    # bias
            ],
            out_specs=pl.BlockSpec((tm, tn), lambda i, j: (i, j)),
            compiler_params=pltpu.CompilerParams(
                dimension_semantics=("parallel", "parallel"),
                vmem_limit_bytes=_VMEM_LIMIT_BYTES,
            ),
        )(x_bf, w_t, b2d)
    else:
        y_p = pl.pallas_call(
            _linear_kernel_multi_k,
            out_shape=jax.ShapeDtypeStruct((B, out_p), out_dtype),
            grid=(gm, gn, gk),
            in_specs=[
                pl.BlockSpec((tm, tk), lambda i, j, k: (i, k)),
                pl.BlockSpec((tk, tn), lambda i, j, k: (k, j)),
                pl.BlockSpec((1, tn), lambda i, j, k: (0, j)),
            ],
            out_specs=pl.BlockSpec((tm, tn), lambda i, j, k: (i, j)),
            scratch_shapes=[pltpu.VMEM((tm, tn), jnp.float32)],
            compiler_params=pltpu.CompilerParams(
                dimension_semantics=("parallel", "parallel", "arbitrary"),
                vmem_limit_bytes=_VMEM_LIMIT_BYTES,
            ),
        )(x_bf, w_t, b2d)

    if return_padded or out_p == out_features:
        return y_p
    # NOTE: this slice is a separate XLA copy (extra HBM pass); pass
    # return_padded=True and let the consumer accept the lane-padded buffer to
    # avoid paying output bandwidth twice.
    return y_p[:, :out_features]


if __name__ == "__main__":
    # Shapes consistent with the module: batch=8, in_features=32, out_features=64.
    B, IN_F, OUT_F = 8, 32, 64

    key = jax.random.PRNGKey(0)
    kx, kw, kb = jax.random.split(key, 3)

    # Deterministic init mimicking PyTorch Linear default (U[-1/sqrt(in), 1/sqrt(in)]).
    bound = 1.0 / (IN_F ** 0.5)
    weight = jax.random.uniform(kw, (OUT_F, IN_F), jnp.float32, -bound, bound)
    bias = jax.random.uniform(kb, (OUT_F,), jnp.float32, -bound, bound)
    x = jax.random.normal(kx, (B, IN_F), jnp.float32)

    # Init-time parameter prep (transpose + bf16 cast + padding) — done once.
    w_t, b2d = prepare_params(weight, bias)

    y = fcnet_forward(x, w_t, b2d, OUT_F)
    jax.block_until_ready(y)

    # Reference with the same bf16 operand rounding and f32 accumulation.
    x_bf = x.astype(jnp.bfloat16).astype(jnp.float32)
    w_bf = weight.astype(jnp.bfloat16).astype(jnp.float32)
    y_ref = x_bf @ w_bf.T + bias

    assert y.shape == (B, OUT_F), y.shape
    max_err = float(jnp.abs(y - y_ref).max())
    assert jnp.allclose(y, y_ref, atol=2e-3, rtol=2e-3), max_err

    print("KERNEL_OK")
</pallas_src>

<mosaic_0001>
module attributes {stable_mosaic.version = 11 : i64} {
  func.func @_linear_kernel_single_k(%arg0: i32, %arg1: i32, %arg2: memref<8x32xbf16, #tpu.memory_space<vmem>>, %arg3: memref<32x128xbf16, #tpu.memory_space<vmem>>, %arg4: memref<1x128xf32, #tpu.memory_space<vmem>>, %arg5: memref<8x128xf32, #tpu.memory_space<vmem>>) attributes {dimension_semantics = [#tpu.dimension_semantics<parallel>, #tpu.dimension_semantics<parallel>], iteration_bounds = array<i64: 1, 1>, scalar_prefetch = 0 : i64, scratch_operands = 0 : i64, tpu.core_type = #tpu.core_type<tc>, window_params = [{transform_indices = @transform_0, window_bounds = array<i64: 8, 32>}, {transform_indices = @transform_1, window_bounds = array<i64: 32, 128>}, {transform_indices = @transform_2, window_bounds = array<i64: 1, 128>}, {transform_indices = @transform_3, window_bounds = array<i64: 8, 128>}]} {
    %c0 = arith.constant 0 : index
    %c0_0 = arith.constant 0 : index
    %0 = vector.load %arg2[%c0, %c0_0] : memref<8x32xbf16, #tpu.memory_space<vmem>>, vector<8x32xbf16>
    %c0_1 = arith.constant 0 : index
    %c0_2 = arith.constant 0 : index
    %1 = vector.load %arg3[%c0_1, %c0_2] : memref<32x128xbf16, #tpu.memory_space<vmem>>, vector<32x128xbf16>
    %cst = arith.constant dense<0.000000e+00> : vector<8x128xf32>
    %2 = tpu.matmul %0, %1, %cst {dimension_numbers = #tpu.dot_dimension_numbers<[1], [0], [0], [1], [0, 0, 1, 1], [], []>} : vector<8x32xbf16>, vector<32x128xbf16>, vector<8x128xf32> -> vector<8x128xf32>
    %c0_3 = arith.constant 0 : index
    %c0_4 = arith.constant 0 : index
    %3 = vector.load %arg4[%c0_3, %c0_4] : memref<1x128xf32, #tpu.memory_space<vmem>>, vector<1x128xf32>
    %4 = vector.broadcast %3 : vector<1x128xf32> to vector<8x128xf32>
    %5 = arith.addf %2, %4 : vector<8x128xf32>
    %c0_5 = arith.constant 0 : index
    %c0_6 = arith.constant 0 : index
    %6 = vector.load %arg5[%c0_5, %c0_6] : memref<8x128xf32, #tpu.memory_space<vmem>>, vector<8x128xf32>
    tpu.vector_store %arg5[%c0_5, %c0_6], %5 {strides = array<i32>} : memref<8x128xf32, #tpu.memory_space<vmem>>, vector<8x128xf32>,
    return
  }
  func.func @transform_0(%arg0: i32, %arg1: i32) -> (i32, i32) {
    %c0_i32 = arith.constant 0 : i32
    %c0_i32_0 = arith.constant 0 : i32
    return %arg0, %c0_i32 : i32, i32
  }
  func.func @transform_1(%arg0: i32, %arg1: i32) -> (i32, i32) {
    %c0_i32 = arith.constant 0 : i32
    %c0_i32_0 = arith.constant 0 : i32
    return %c0_i32, %arg1 : i32, i32
  }
  func.func @transform_2(%arg0: i32, %arg1: i32) -> (i32, i32) {
    %c0_i32 = arith.constant 0 : i32
    %c0_i32_0 = arith.constant 0 : i32
    return %c0_i32, %arg1 : i32, i32
  }
  func.func @transform_3(%arg0: i32, %arg1: i32) -> (i32, i32) {
    %c0_i32 = arith.constant 0 : i32
    return %arg0, %arg1 : i32, i32
  }
}

</mosaic_0001>

<bundles_post_ra>
// kernel: tpu_custom_call.1
= control target key start
LH: loop header
LB: loop body
LE: loop exit
PB: predicated region body
PF: predicated region fallthrough
CT: control target
= control target key end

     0   :  { %8 = vsyncpa [#allocation3], 0  ;;  %s296_s0 = inlined_call_operand.hbm [shape: bf16[8,32], index: 0, kind: input, shape index: {}]   ;;  %s297_s1 = inlined_call_operand.hbm [shape: bf16[32,128], index: 1, kind: input, shape index: {}]   ;;  %s298_s2 = inlined_call_operand.vmem [shape: f32[1,128], index: 2, kind: input, shape index: {}]   ;;  %s299_s3 = inlined_call_operand.hbm [shape: f32[8,128], index: 3, kind: output, shape index: {}]  }
   0x1   :  { %9 = vsyncpa [#allocation6], 0 }
   0x2   :  { %10 = vsyncpa [#allocation4], 0  ;;  %s223_s12 = smov [#allocation2]   ;;  %s224_s14 = smov [#allocation5]  }
   0x3   :  { %s17_s13 = sshll.u32 %s223_s12, 4  ;;  %s26_s15 = sshll.u32 %s224_s14, 4  ;;  %s18_s13 = int_to_ptr.vmem [resolvable:$true] %s17_s13  ;;  %s250_s15 = int_to_ptr.vmem [resolvable:$true] %s26_s15 }
   0x4   :  { %s151_s18 = scalar_lea.hbm %s296_s0, 64 }
   0x5   :  { %p152_p0 = scmp.ne.s32.totalorder %s296_s0, %s151_s18  ;;  %p155_p1 = scmp.lt.u32.totalorder %s151_s18, %s296_s0 }
   0x7   :  { %p157_p2 = pnand %p155_p1, %p152_p0 }
   0x9   :  { %160 = shalt.err (!%p157_p2)
}
   0xa   :  { %s161_s23 = scalar_lea.vmem %s18_s13, 64  ;;  %p166_p4 = scmp.lt.s32.totalorder %s18_s13, %s18_s13 }
   0xb   :  { %p162_p3 = scmp.ne.s32.totalorder %s18_s13, %s161_s23  ;;  %p167_p5 = scmp.lt.s32.totalorder %s161_s23, %s161_s23 }
   0xd   :  { %p168_p6 = por %p167_p5, %p166_p4 }
   0xf   :  { %p169_p7 = pnand %p168_p6, %p162_p3 }
  0x11   :  { %172 = shalt.err (!%p169_p7)
}
  0x12   :  { %20 = dma.hbm_to_vmem [thread:$0]  %s296_s0, 64, %s18_s13, [#allocation3]  }
  0x13   :  { %s173_s28 = scalar_lea.hbm %s297_s1, 256 }
  0x14   :  { %p174_p8 = scmp.ne.s32.totalorder %s297_s1, %s173_s28  ;;  %p177_p9 = scmp.lt.u32.totalorder %s173_s28, %s297_s1 }
  0x16   :  { %p179_p10 = pnand %p177_p9, %p174_p8 }
  0x18   :  { %182 = shalt.err (!%p179_p10)
}
  0x19   :  { %s183_s6 = scalar_lea.vmem %s250_s15, 256  ;;  %p188_p12 = scmp.lt.s32.totalorder %s250_s15, %s250_s15 }
  0x1a   :  { %p184_p11 = scmp.ne.s32.totalorder %s250_s15, %s183_s6  ;;  %p189_p13 = scmp.lt.s32.totalorder %s183_s6, %s183_s6 }
  0x1c   :  { %p190_p0 = por %p189_p13, %p188_p12 }
  0x1e   :  { %p191_p1 = pnand %p190_p0, %p184_p11 }
  0x20   :  { %194 = shalt.err (!%p191_p1)
}
  0x21   :  { %s225_s0 = smov 64   ;;  %s226_s7 = smov 4  }
  0x22   :  { %32 = dma.hbm_to_vmem [thread:$0]  %s297_s1, 256, %s250_s15, [#allocation6], %s225_s0, %s225_s0, %s226_s7  }
  0x23   :  { %217 = dma.done.wait [#allocation3], 64  }
  0x24   :  { %218 = vsyncadd [#allocation3], 4294967232 }
  0x25   :  { %219 = dma.done.wait [#allocation6], 256  }
  0x26   :  { %220 = vsyncadd [#allocation6], 4294967040  ;;  %v227_v0 = vmov 0.0   ;;  %vm228_vm0 = vmmov 0   ;;  %v149_v1 = vld [vmem:[#allocation5] sm:$0xff]   ;;  %v150_v2 = vld [vmem:[#allocation5 + $0x8] sm:$0xff]  }
  0x27   :  { %134 = vmatprep.subr.bf16.mxu0 %v227_v0  ;;  %138 = vmatprep.mubr.msk.bf16.mxu0 %vm228_vm0, %v227_v0  ;;  %v42_v3 = vld [vmem:[#allocation2] sm:$0xf]  ;;  %vm66_vm1 = vcmask 261120   ;;  %s229_s1 = smov [#allocation7]  }
  0x28   :  { %135 = vmatpush3.bf16.msra.mxu0 %v149_v1  ;;  %v127_v4 = vld [vmem:[%s298_s2] ss:$0 sm:$0xff]  ;;  %s117_s12 = sshll.u32 %s229_s1, 4  ;;  %s118_s12 = int_to_ptr.vmem [resolvable:$true] %s117_s12 }
  0x29   :  { %136 = vmatprep.subr.bf16.mxu0 %v227_v0  ;;  %s195_s13 = scalar_lea.vmem %s118_s12, 128  ;;  %p200_p3 = scmp.lt.s32.totalorder %s118_s12, %s118_s12 }
  0x2a   :  { %p196_p2 = scmp.ne.s32.totalorder %s118_s12, %s195_s13  ;;  %p201_p4 = scmp.lt.s32.totalorder %s195_s13, %s195_s13 }
  0x2c   :  { %137 = vmatpush3.bf16.msra.mxu0 %v150_v2  ;;  %p202_p5 = por %p201_p4, %p200_p3 }
  0x2e   :  { %p203_p6 = pnand %p202_p5, %p196_p2 }
  0x2f   :  { %139 = vmatmul.mubr.msk.bf16.vlgmr.msra.gmra.mrb[0].mxu0 %vm66_vm1, %v42_v3 }
 0x102   :  { %v104_v5 = vpop.f32.mrb[0].mxu0 }
 0x103   :  { %v105_v6 = vadd.f32 %v127_v4, %v104_v5  ;;  %v140_v7 = vpop.f32.mrb[1].mxu0 }
 0x104   :  { %v107_v8 = vpop.f32.mrb[2].mxu0 }
 0x105   :  { %110 = vst [vmem:[#allocation7] sm:$0xff] %v105_v6  ;;  %v141_v9 = vpop.f32.mrb[3].mxu0 }
 0x106   :  { %206 = shalt.err (!%p203_p6)
}
 0x107   :  { %s207_s2 = scalar_lea.hbm %s299_s3, 128 }
 0x108   :  { %p208_p7 = scmp.ne.s32.totalorder %s299_s3, %s207_s2  ;;  %p211_p8 = scmp.lt.u32.totalorder %s207_s2, %s299_s3 }
 0x10a   :  { %p213_p9 = pnand %p211_p8, %p208_p7 }
 0x10c   :  { %216 = shalt.err (!%p213_p9)
}
 0x10d   :  { %120 = dma.vmem_to_hbm [thread:$0]  %s118_s12, 128, %s299_s3, [#allocation4]  }
 0x10e   :  { %221 = dma.done.wait [#allocation4], 128  }
 0x10f   :  { %222 = vsyncadd [#allocation4], 4294967168 }
 0x110   :  { %124 = vsyncpa [#allocation3], 1 }
 0x111   :  { %125 = vsyncpa [#allocation6], 1 }
 0x112   :  { %126 = vsyncpa [#allocation4], 1 }

</bundles_post_ra>
